<compile_context>
chip_gen: v6e
topology: v6e:2x2x1
jax: 0.10.0
libtpu: 0.0.40
codegen_flags: <defaults>
</compile_context>

<pallas_src>
import functools

import jax
import jax.numpy as jnp
from jax.experimental import pallas as pl
from jax.experimental.pallas import tpu as pltpu


def _round_up(x, m):
    return ((x + m - 1) // m) * m


# Keep double-buffered tiles comfortably under v7x's 64 MiB physical VMEM
# (and trivially under v5e/v6e's 128 MiB).
_VMEM_BUDGET_BYTES = 40 * 1024 * 1024
_VMEM_LIMIT_BYTES = 48 * 1024 * 1024


def _vmem_footprint(tm, tn, tk, in_bytes, out_bytes=4):
    # Double-buffered x/w/bias input tiles + double-buffered f32 output tile.
    return 2 * (tm * tk + tk * tn + tn) * in_bytes + 2 * tm * tn * out_bytes


def _choose_tiles(B, in_dim, out_dim, in_bytes):
    """(8,128)/MXU-aligned tiles sized from the VMEM budget."""
    m_pad = _round_up(B, 8)
    n_pad = _round_up(out_dim, 128)
    k_pad = _round_up(in_dim, 128)

    # Collapse the M grid for typical batch sizes -> weight read from HBM once.
    tm = min(512, m_pad)
    tn = min(1024, n_pad)
    tk = min(2048, k_pad)

    # v7x has 2 TensorCores: if the M grid collapses to one block, keep the N
    # grid >= 2 parallel blocks so the second core isn't idle.
    if m_pad <= tm and n_pad >= 256:
        tn = min(tn, max(128, (n_pad // 2 // 128) * 128))

    # Shrink until the double-buffered footprint fits the VMEM budget.
    while _vmem_footprint(tm, tn, tk, in_bytes) > _VMEM_BUDGET_BYTES:
        if tk > 128:
            tk //= 2
        elif tn > 128:
            tn //= 2
        elif tm > 8:
            tm //= 2
        else:
            break
    return tm, tn, tk


def _linear_kernel(x_ref, w_ref, b_ref, o_ref):
    """One (tm, tn) output tile; K-reduction runs over grid axis 2.

    The output block index (m, n) is constant across k, so o_ref stays
    VMEM-resident across the reduction and doubles as the f32 accumulator.
    """
    k = pl.program_id(2)

    @pl.when(k == 0)
    def _():
        o_ref[...] = jnp.zeros_like(o_ref)

    o_ref[...] += jnp.dot(
        x_ref[...], w_ref[...], preferred_element_type=jnp.float32
    )

    # Bias is added exactly once, in the K-epilogue.
    @pl.when(k == pl.num_programs(2) - 1)
    def _():
        o_ref[...] += b_ref[...]


@functools.partial(
    jax.jit,
    static_argnames=("tm", "tn", "tk", "force_pallas", "use_bf16_inputs"),
)
def linear_layer(
    x, weight_t, bias, *, tm=None, tn=None, tk=None,
    force_pallas=False, use_bf16_inputs=False,
):
    """y = x @ weight_t + bias.

    x:        [B, in_dim]        float32
    weight_t: [in_dim, out_dim]  float32  (transpose of torch nn.Linear.weight)
    bias:     [out_dim]          float32
    returns:  [B, out_dim]       float32
    """
    B, in_dim = x.shape
    out_dim = weight_t.shape[1]

    in_dtype = jnp.bfloat16 if use_bf16_inputs else x.dtype
    in_bytes = 2 if use_bf16_inputs else 4

    ctm, ctn, ctk = _choose_tiles(B, in_dim, out_dim, in_bytes)
    tm = ctm if tm is None else tm
    tn = ctn if tn is None else tn
    tk = ctk if tk is None else tk

    Mp = _round_up(B, tm)
    Np = _round_up(out_dim, tn)
    Kp = _round_up(in_dim, tk)
    grid = (Mp // tm, Np // tn, Kp // tk)

    # Tiny problem (single grid step): the fused XLA op wins outright.
    if not force_pallas and grid == (1, 1, 1):
        return (x @ weight_t + bias.reshape(1, -1)).astype(x.dtype)

    # Zero-pad only when needed (zero K rows/cols don't change the reduction).
    x_p = x if (Mp == B and Kp == in_dim) else jnp.pad(
        x, ((0, Mp - B), (0, Kp - in_dim)))
    w_p = weight_t if (Kp == in_dim and Np == out_dim) else jnp.pad(
        weight_t, ((0, Kp - in_dim), (0, Np - out_dim)))
    b_p = bias.reshape(1, -1)
    if Np != out_dim:
        b_p = jnp.pad(b_p, ((0, 0), (0, Np - out_dim)))

    if use_bf16_inputs:
        # bf16 inputs, f32 accumulation (preferred_element_type in the kernel).
        x_p = x_p.astype(in_dtype)
        w_p = w_p.astype(in_dtype)

    cost = pl.CostEstimate(
        flops=2 * Mp * Np * Kp,
        bytes_accessed=Mp * Kp * in_bytes + Kp * Np * in_bytes + Mp * Np * 4,
        transcendentals=0,
    )

    out = pl.pallas_call(
        _linear_kernel,
        out_shape=jax.ShapeDtypeStruct((Mp, Np), jnp.float32),
        grid_spec=pltpu.PrefetchScalarGridSpec(
            num_scalar_prefetch=0,
            grid=grid,
            in_specs=[
                # x tile depends on (m, k)
                pl.BlockSpec((tm, tk), lambda m, n, k: (m, k)),
                # weight tile depends on (k, n); with the M grid collapsed for
                # typical batch sizes, the weight matrix is streamed once.
                pl.BlockSpec((tk, tn), lambda m, n, k: (k, n)),
                # bias tile depends only on n
                pl.BlockSpec((1, tn), lambda m, n, k: (0, n)),
            ],
            out_specs=pl.BlockSpec((tm, tn), lambda m, n, k: (m, n)),
        ),
        compiler_params=pltpu.CompilerParams(
            dimension_semantics=("parallel", "parallel", "arbitrary"),
            vmem_limit_bytes=_VMEM_LIMIT_BYTES,
        ),
        cost_estimate=cost,
    )(x_p, w_p, b_p)

    out = out[:B, :out_dim]
    return out.astype(x.dtype)


def init_linear_params(key, in_dim, out_dim):
    """Xavier-normal weight (torch.nn.init.xavier_normal_), zero bias.

    The weight is stored pre-transposed ([in_dim, out_dim]) once at init so the
    kernel never transposes or re-copies it per call.
    """
    std = (2.0 / (in_dim + out_dim)) ** 0.5
    w_t = jax.random.normal(key, (in_dim, out_dim), dtype=jnp.float32) * std
    b = jnp.zeros((out_dim,), dtype=jnp.float32)
    return w_t, b


if __name__ == "__main__":
    key = jax.random.PRNGKey(0)
    k1, k2, k3, k4 = jax.random.split(key, 4)

    # --- Test 1: tiny shapes consistent with LinearLayer(in_dim=32, out_dim=16),
    # batch=8, forced through the Pallas path to exercise the kernel.
    in_dim, out_dim, batch = 32, 16, 8
    x_s = jax.random.normal(k1, (batch, in_dim), dtype=jnp.float32)
    w_s, b_s = init_linear_params(k2, in_dim, out_dim)
    y_s = jax.block_until_ready(linear_layer(x_s, w_s, b_s, force_pallas=True))
    y_s_ref = x_s @ w_s + b_s.reshape(1, -1)
    assert y_s.shape == (batch, out_dim)
    assert jnp.allclose(y_s, y_s_ref, atol=1e-4, rtol=1e-4)

    # Same tiny shapes via the default path (single-tile problem -> fused jnp.dot).
    y_fb = jax.block_until_ready(linear_layer(x_s, w_s, b_s))
    assert jnp.allclose(y_fb, y_s_ref, atol=1e-4, rtol=1e-4)

    # --- Test 2: aligned multi-tile problem (no padding, multi-block N grid).
    in_dim2, out_dim2, batch2 = 512, 384, 128
    x_l = jax.random.normal(k3, (batch2, in_dim2), dtype=jnp.float32)
    w_l, b_l = init_linear_params(k4, in_dim2, out_dim2)
    y_l = jax.block_until_ready(linear_layer(x_l, w_l, b_l))
    y_l_ref = jnp.dot(x_l, w_l, precision=jax.lax.Precision.HIGHEST) + b_l
    assert y_l.shape == (batch2, out_dim2)
    assert jnp.allclose(y_l, y_l_ref, atol=1e-3, rtol=1e-3)

    print("KERNEL_OK")
</pallas_src>

<mosaic_0001>
module attributes {stable_mosaic.version = 11 : i64} {
  func.func @_linear_kernel(%arg0: i32, %arg1: i32, %arg2: i32, %arg3: memref<8x128xf32, #tpu.memory_space<vmem>>, %arg4: memref<128x128xf32, #tpu.memory_space<vmem>>, %arg5: memref<1x128xf32, #tpu.memory_space<vmem>>, %arg6: memref<8x128xf32, #tpu.memory_space<vmem>>) attributes {dimension_semantics = [#tpu.dimension_semantics<parallel>, #tpu.dimension_semantics<parallel>, #tpu.dimension_semantics<arbitrary>], iteration_bounds = array<i64: 1, 1, 1>, scalar_prefetch = 0 : i64, scratch_operands = 0 : i64, tpu.core_type = #tpu.core_type<tc>, window_params = [{transform_indices = @transform_0, window_bounds = array<i64: 8, 128>}, {transform_indices = @transform_1, window_bounds = array<i64: 128, 128>}, {transform_indices = @transform_2, window_bounds = array<i64: 1, 128>}, {transform_indices = @transform_3, window_bounds = array<i64: 8, 128>}]} {
    %c0_i32 = arith.constant 0 : i32
    %0 = arith.cmpi eq, %arg2, %c0_i32 : i32
    %1 = arith.extui %0 : i1 to i32
    %c0_i32_0 = arith.constant 0 : i32
    %2 = arith.cmpi ne, %1, %c0_i32_0 : i32
    scf.if %2 {
      %cst_10 = arith.constant 0.000000e+00 : f32
      %12 = vector.broadcast %cst_10 : f32 to vector<8x128xf32>
      %c0_11 = arith.constant 0 : index
      %c0_12 = arith.constant 0 : index
      %13 = vector.load %arg6[%c0_11, %c0_12] : memref<8x128xf32, #tpu.memory_space<vmem>>, vector<8x128xf32>
      tpu.vector_store %arg6[%c0_11, %c0_12], %12 {strides = array<i32>} : memref<8x128xf32, #tpu.memory_space<vmem>>, vector<8x128xf32>,
    } else {
    }
    %c0 = arith.constant 0 : index
    %c0_1 = arith.constant 0 : index
    %3 = vector.load %arg6[%c0, %c0_1] : memref<8x128xf32, #tpu.memory_space<vmem>>, vector<8x128xf32>
    %c0_2 = arith.constant 0 : index
    %c0_3 = arith.constant 0 : index
    %4 = vector.load %arg3[%c0_2, %c0_3] : memref<8x128xf32, #tpu.memory_space<vmem>>, vector<8x128xf32>
    %c0_4 = arith.constant 0 : index
    %c0_5 = arith.constant 0 : index
    %5 = vector.load %arg4[%c0_4, %c0_5] : memref<128x128xf32, #tpu.memory_space<vmem>>, vector<128x128xf32>
    %cst = arith.constant dense<0.000000e+00> : vector<8x128xf32>
    %6 = tpu.matmul %4, %5, %cst {dimension_numbers = #tpu.dot_dimension_numbers<[1], [0], [0], [1], [0, 0, 1, 1], [], []>} : vector<8x128xf32>, vector<128x128xf32>, vector<8x128xf32> -> vector<8x128xf32>
    %7 = arith.addf %3, %6 : vector<8x128xf32>
    %c0_6 = arith.constant 0 : index
    %c0_7 = arith.constant 0 : index
    %8 = vector.load %arg6[%c0_6, %c0_7] : memref<8x128xf32, #tpu.memory_space<vmem>>, vector<8x128xf32>
    tpu.vector_store %arg6[%c0_6, %c0_7], %7 {strides = array<i32>} : memref<8x128xf32, #tpu.memory_space<vmem>>, vector<8x128xf32>,
    %c0_i32_8 = arith.constant 0 : i32
    %9 = arith.cmpi eq, %arg2, %c0_i32_8 : i32
    %10 = arith.extui %9 : i1 to i32
    %c0_i32_9 = arith.constant 0 : i32
    %11 = arith.cmpi ne, %10, %c0_i32_9 : i32
    scf.if %11 {
      %c0_10 = arith.constant 0 : index
      %c0_11 = arith.constant 0 : index
      %12 = vector.load %arg6[%c0_10, %c0_11] : memref<8x128xf32, #tpu.memory_space<vmem>>, vector<8x128xf32>
      %c0_12 = arith.constant 0 : index
      %c0_13 = arith.constant 0 : index
      %13 = vector.load %arg5[%c0_12, %c0_13] : memref<1x128xf32, #tpu.memory_space<vmem>>, vector<1x128xf32>
      %14 = vector.broadcast %13 : vector<1x128xf32> to vector<8x128xf32>
      %15 = arith.addf %12, %14 : vector<8x128xf32>
      %c0_14 = arith.constant 0 : index
      %c0_15 = arith.constant 0 : index
      %16 = vector.load %arg6[%c0_14, %c0_15] : memref<8x128xf32, #tpu.memory_space<vmem>>, vector<8x128xf32>
      tpu.vector_store %arg6[%c0_14, %c0_15], %15 {strides = array<i32>} : memref<8x128xf32, #tpu.memory_space<vmem>>, vector<8x128xf32>,
    } else {
    }
    return
  }
  func.func @transform_0(%arg0: i32, %arg1: i32, %arg2: i32) -> (i32, i32) {
    %c0_i32 = arith.constant 0 : i32
    return %arg0, %arg2 : i32, i32
  }
  func.func @transform_1(%arg0: i32, %arg1: i32, %arg2: i32) -> (i32, i32) {
    %c0_i32 = arith.constant 0 : i32
    return %arg2, %arg1 : i32, i32
  }
  func.func @transform_2(%arg0: i32, %arg1: i32, %arg2: i32) -> (i32, i32) {
    %c0_i32 = arith.constant 0 : i32
    %c0_i32_0 = arith.constant 0 : i32
    return %c0_i32, %arg1 : i32, i32
  }
  func.func @transform_3(%arg0: i32, %arg1: i32, %arg2: i32) -> (i32, i32) {
    %c0_i32 = arith.constant 0 : i32
    return %arg0, %arg1 : i32, i32
  }
}

</mosaic_0001>

<bundles_post_ra>
// kernel: linear_layer.1
= control target key start
LH: loop header
LB: loop body
LE: loop exit
PB: predicated region body
PF: predicated region fallthrough
CT: control target
= control target key end

     0   :  { %v215_v1 = vmov 0.0   ;;  %vm216_vm0 = vmmov 0   ;;  %s295_s0 = inlined_call_operand.vmem [shape: f32[8,128], index: 0, kind: input, shape index: {}]   ;;  %s296_s1 = inlined_call_operand.vmem [shape: f32[128,128], index: 1, kind: input, shape index: {}]   ;;  %s297_s2 = inlined_call_operand.vmem [shape: f32[1,128], index: 2, kind: input, shape index: {}]   ;;  %s298_s3 = inlined_call_operand.hbm [shape: f32[8,128], index: 3, kind: output, shape index: {}]  }
   0x1   :  { %v37_v0 = vld [vmem:[%s296_s1 + $0x78] sm:$0xff]  ;;  %155 = vmatprep.subr.mxu0 %v215_v1  ;;  %v36_v2 = vld [vmem:[%s296_s1 + $0x70] sm:$0xff]  ;;  %187 = vmatprep.mubr.msk.f32.mxu0 %vm216_vm0, %v215_v1  ;;  %v35_v3 = vld [vmem:[%s296_s1 + $0x68] sm:$0xff] }
   0x2   :  { %156 = vmatpush3.msra.mxu0 %v37_v0  ;;  %v34_v4 = vld [vmem:[%s296_s1 + $0x60] sm:$0xff] }
   0x3   :  { %157 = vmatprep.subr.mxu0 %v215_v1 }
   0x4   :  { %158 = vmatpush3.msra.mxu0 %v36_v2 }
   0x5   :  { %159 = vmatprep.subr.mxu0 %v215_v1 }
   0x6   :  { %8 = vsyncpa [#allocation3], 0  ;;  %160 = vmatpush3.msra.mxu0 %v35_v3  ;;  %v33_v5 = vld [vmem:[%s296_s1 + $0x58] sm:$0xff]  ;;  %v32_v6 = vld [vmem:[%s296_s1 + $0x50] sm:$0xff]  ;;  %s217_s21 = smov [#allocation2]  }
   0x7   :  { %161 = vmatprep.subr.mxu0 %v215_v1  ;;  %v31_v7 = vld [vmem:[%s296_s1 + $0x48] sm:$0xff]  ;;  %v30_v8 = vld [vmem:[%s296_s1 + $0x40] sm:$0xff]  ;;  %v29_v9 = vld [vmem:[%s296_s1 + $0x38] sm:$0xff]  ;;  %s129_s22 = sshll.u32 %s217_s21, 4  ;;  %s130_s22 = int_to_ptr.vmem [resolvable:$true] %s129_s22 }
   0x8   :  { %162 = vmatpush3.msra.mxu0 %v34_v4  ;;  %v28_v10 = vld [vmem:[%s296_s1 + $0x30] sm:$0xff]  ;;  %v27_v11 = vld [vmem:[%s296_s1 + $0x28] sm:$0xff]  ;;  %v26_v12 = vld [vmem:[%s296_s1 + $0x20] sm:$0xff]  ;;  %p198_p1 = scmp.lt.s32.totalorder %s130_s22, %s130_s22 }
   0x9   :  { %163 = vmatprep.subr.mxu0 %v215_v1  ;;  %v25_v13 = vld [vmem:[%s296_s1 + $0x18] sm:$0xff]  ;;  %v24_v14 = vld [vmem:[%s296_s1 + $0x10] sm:$0xff]  ;;  %v23_v15 = vld [vmem:[%s296_s1 + $0x8] sm:$0xff] }
   0xa   :  { %164 = vmatpush3.msra.mxu0 %v33_v5  ;;  %v22_v16 = vld [vmem:[%s296_s1] sm:$0xff]  ;;  %s193_s1 = scalar_lea.vmem %s130_s22, 128 }
   0xb   :  { %165 = vmatprep.subr.mxu0 %v215_v1  ;;  %v21_v17 = vld [vmem:[%s295_s0] sm:$0xff]  ;;  %p194_p0 = scmp.ne.s32.totalorder %s130_s22, %s193_s1  ;;  %p199_p2 = scmp.lt.s32.totalorder %s193_s1, %s193_s1 }
   0xc   :  { %166 = vmatpush3.msra.mxu0 %v32_v6  ;;  %v137_v19 = vld [vmem:[%s297_s2] ss:$0 sm:$0xff] }
   0xd   :  { %167 = vmatprep.subr.mxu0 %v215_v1  ;;  %p200_p3 = por %p199_p2, %p198_p1 }
   0xe   :  { %168 = vmatpush3.msra.mxu0 %v31_v7 }
   0xf   :  { %169 = vmatprep.subr.mxu0 %v215_v1  ;;  %p201_p4 = pnand %p200_p3, %p194_p0 }
  0x10   :  { %170 = vmatpush3.msra.mxu0 %v30_v8 }
  0x11   :  { %171 = vmatprep.subr.mxu0 %v215_v1 }
  0x12   :  { %172 = vmatpush3.msra.mxu0 %v29_v9 }
  0x13   :  { %173 = vmatprep.subr.mxu0 %v215_v1 }
  0x14   :  { %174 = vmatpush3.msra.mxu0 %v28_v10 }
  0x15   :  { %175 = vmatprep.subr.mxu0 %v215_v1 }
  0x16   :  { %176 = vmatpush3.msra.mxu0 %v27_v11 }
  0x17   :  { %177 = vmatprep.subr.mxu0 %v215_v1 }
  0x18   :  { %178 = vmatpush3.msra.mxu0 %v26_v12 }
  0x19   :  { %179 = vmatprep.subr.mxu0 %v215_v1 }
  0x1a   :  { %180 = vmatpush3.msra.mxu0 %v25_v13 }
  0x1b   :  { %181 = vmatprep.subr.mxu0 %v215_v1 }
  0x1c   :  { %182 = vmatpush3.msra.mxu0 %v24_v14 }
  0x1d   :  { %183 = vmatprep.subr.mxu0 %v215_v1 }
  0x1e   :  { %184 = vmatpush3.msra.mxu0 %v23_v15 }
  0x1f   :  { %185 = vmatprep.subr.mxu0 %v215_v1 }
  0x20   :  { %186 = vmatpush3.msra.mxu0 %v22_v16 }
  0x21   :  { %188 = vmatmul.mubr.f32.vlgmr.msra.gmra.mxu0 %v21_v17 }
  0xe1   :  { %v104_v18 = vpop.f32.mrf.mxu0 }
  0xe2   :  { %v121_v21 = vadd.f32 %v137_v19, %v104_v18 }
  0xe3   :  { %v189_v20 = vpop.f32.mrf.mxu0 }
  0xe4   :  { %122 = vst [vmem:[#allocation2] sm:$0xff] %v121_v21 }
  0xe5   :  { %204 = shalt.err (!%p201_p4)
}
  0xe6   :  { %132 = dma.vmem_to_hbm [thread:$0]  %s130_s22, 128, %s298_s3, [#allocation3]  }
  0xe7   :  { %213 = dma.done.wait [#allocation3], 128  }
  0xe8   :  { %214 = vsyncadd [#allocation3], 4294967168 }
  0xe9   :  { %136 = vsyncpa [#allocation3], 1 }

</bundles_post_ra>
